<compile_context>
chip_gen: v7x
topology: tpu7x:2x2x1
jax: 0.10.0
libtpu: 0.0.40
codegen_flags: <defaults>
</compile_context>

<pallas_src>
import jax
import jax.numpy as jnp
from jax.experimental import pallas as pl
from jax.experimental.pallas import tpu as pltpu


def _dma_flatten_kernel(x_hbm, o_hbm, sem):
    # Single HBM->HBM DMA of the already-flattened (rows, num_features) view.
    # No VMEM staging, no vld/vst slot work, no tiling to tune.
    cp = pltpu.make_async_copy(x_hbm, o_hbm, sem)
    cp.start()
    cp.wait()


def flatten_layer(x, num_features, *, materialize=False):
    """Pallas equivalent of FlattenLayer(num_features).forward(x).

    x: any shape whose total size is divisible by num_features (NCHW typical).
    Returns an array of shape (-1, num_features), same dtype as x.

    materialize=False (default): metadata-only reshape — identical to torch
    .view(), free in XLA.  materialize=True: produce a fresh, contiguously
    laid-out buffer via a single HBM->HBM DMA inside a Pallas kernel.
    """
    total = x.size
    assert total % num_features == 0, "num_features must divide total number of elements"
    rows = total // num_features

    if not materialize:
        # First-order optimization from the review: don't run a kernel at all.
        return x.reshape(rows, num_features)

    itemsize = jnp.dtype(x.dtype).itemsize
    x2d = x.reshape(rows, num_features)  # metadata-only

    return pl.pallas_call(
        _dma_flatten_kernel,
        out_shape=jax.ShapeDtypeStruct((rows, num_features), x.dtype),
        in_specs=[pl.BlockSpec(memory_space=pl.ANY)],
        out_specs=pl.BlockSpec(memory_space=pl.ANY),
        scratch_shapes=[pltpu.SemaphoreType.DMA(())],
        cost_estimate=pl.CostEstimate(
            flops=0,
            transcendentals=0,
            bytes_accessed=2 * total * itemsize,
        ),
    )(x2d)


if __name__ == "__main__":
    key = jax.random.PRNGKey(0)
    # Small NCHW input: batch=2, channels=4, spatial=16x16
    B, C, H, W = 2, 4, 16, 16
    num_features = C * H * W  # 1024
    x = jax.random.normal(key, (B, C, H, W), dtype=jnp.float32)

    ref = x.reshape(-1, num_features)

    # Default (recommended) path: zero-copy metadata reshape.
    y_fast = jax.block_until_ready(flatten_layer(x, num_features))
    assert y_fast.shape == (B, num_features), y_fast.shape
    assert jnp.array_equal(y_fast, ref), "mismatch vs reference reshape (fast path)"

    # Forced-copy path: exercises the Pallas HBM->HBM DMA kernel.
    y_kernel = jax.block_until_ready(flatten_layer(x, num_features, materialize=True))
    assert y_kernel.shape == (B, num_features), y_kernel.shape
    assert jnp.array_equal(y_kernel, ref), "mismatch vs reference reshape (DMA path)"

    print("KERNEL_OK")
</pallas_src>

<mosaic_0001>
module attributes {stable_mosaic.version = 11 : i64} {
  func.func @_dma_flatten_kernel(%arg0: memref<2x1024xf32, #tpu.memory_space<any>>, %arg1: memref<2x1024xf32, #tpu.memory_space<any>>, %arg2: memref<!tpu.dma_semaphore, #tpu.memory_space<semaphore_mem>>) attributes {dimension_semantics = [], scalar_prefetch = 0 : i64, scratch_operands = 1 : i64, tpu.core_type = #tpu.core_type<tc>} {
    tpu.enqueue_dma source(%arg0 : memref<2x1024xf32, #tpu.memory_space<any>>) target(%arg1 : memref<2x1024xf32, #tpu.memory_space<any>>) target_semaphore(%arg2 : memref<!tpu.dma_semaphore, #tpu.memory_space<semaphore_mem>>)
    tpu.wait_dma2 semaphore(%arg2 : memref<!tpu.dma_semaphore, #tpu.memory_space<semaphore_mem>>) src(%arg0 : memref<2x1024xf32, #tpu.memory_space<any>>) dst(%arg1 : memref<2x1024xf32, #tpu.memory_space<any>>)
    return
  }
}

</mosaic_0001>

<bundles_post_ra>
// kernel: tpu_custom_call.1
= control target key start
LH: loop header
LB: loop body
LE: loop exit
PB: predicated region body
PF: predicated region fallthrough
CT: control target
= control target key end

     0   :  { %s35_s6 = smov [#allocation2]   ;;  %s36_s7 = smov [#allocation3]   ;;  %s54_s0 = inlined_call_operand.hbm [shape: f32[2,1024], index: 0, kind: input, shape index: {}]   ;;  %s55_s1 = inlined_call_operand.hbm [shape: f32[2,1024], index: 1, kind: output, shape index: {}]  }
   0x1   :  { %s37_s8 = smov 0  }
   0x2   :  { %18 = dma.general %s54_s0, 256, %s55_s1, %s35_s6, %s36_s7, [#allocation4], %s37_s8, 0  }
   0x3   :  { %33 = dma.done.wait [#allocation2], 256 }
   0x4   :  { %34 = vsyncadd [#allocation2], 4294967040 }
   0x5   :  { %23 = vsyncmov [#allocation2] }
   0x8   :  { %s24_s13 = vpop.sfrf %23 }
   0x9   :  { %p29_p0 = scmp.ne.s32.totalorder %s24_s13, 0 }
   0xb   :  { %28 = shalt.err (%p29_p0)  }

</bundles_post_ra>
